<compile_context>
chip_gen: v6e
topology: v6e:2x2x1
jax: 0.10.0
libtpu: 0.0.40
codegen_flags: <defaults>
</compile_context>

<pallas_src>
import functools

import jax
import jax.numpy as jnp
from jax.experimental import pallas as pl
from jax.experimental.pallas import tpu as pltpu


def _round_up(x, m):
    return (x + m - 1) // m * m


def _resolve_tiles(N, tile_n, tile_k):
    # Powers of two, clamped for small graphs.  tile_n is additionally clamped
    # to ~N/2 so the "parallel" dst-tile axis has >= 2 entries whenever
    # possible (megacore sharding on v7x).
    tile_n = pl.next_power_of_2(max(8, min(tile_n, max(8, (N + 1) // 2))))
    tile_k = pl.next_power_of_2(max(8, min(tile_k, N)))
    return tile_n, tile_k


def pad_adjacency(adj, N, *, tile_n=512, tile_k=2048):
    """Pad + bf16-cast the dense adjacency once; cache and reuse across calls.

    Doing this outside graph_conv avoids re-materializing an O(N^2) copy on
    every forward call of a mem-bound kernel.
    """
    assert adj.shape == (N, N)
    tile_n, tile_k = _resolve_tiles(N, tile_n, tile_k)
    n_pad_rows = _round_up(N, tile_n)
    n_pad_cols = _round_up(N, tile_k)
    adj_p = jnp.zeros((n_pad_rows, n_pad_cols), jnp.bfloat16)
    return adj_p.at[:N, :N].set(adj.astype(jnp.bfloat16))


def _graphconv_kernel(adj_ref, feat_src_ref, feat_dst_ref, wsum_ref,
                      w1_ref, w2_ref, out_ref, acc_ref, *, activation):
    # adj_ref      : (tile_n, tile_k)    bf16 adjacency block, A[v, u] = multiplicity
    # feat_src_ref : (tile_k, f_in)      bf16 source features (streamed over K)
    # feat_dst_ref : (tile_n, f_in)      f32 this tile's own features (W1 operand)
    # wsum_ref     : (tile_n, 1)         f32 sum of incoming edge weights per dst
    # w1_ref,w2_ref: (f_in, f_out_pad)   f32, zero-padded on the lane axis
    # out_ref      : (tile_n, f_out_pad)
    # acc_ref      : (tile_n, f_in)      f32 scratch accumulator
    k = pl.program_id(1)

    # Fold the u_sub_e edge-weight correction into the accumulator init:
    # acc starts at -wsum·1ᵀ, so after the K loop acc == adj@feat - wsum·1ᵀ.
    @pl.when(k == 0)
    def _():
        acc_ref[...] = jnp.broadcast_to(-wsum_ref[...], acc_ref.shape)

    # Neighborhood aggregation on the MXU (bf16 inputs, f32 accumulation).
    acc_ref[...] += jnp.dot(adj_ref[...], feat_src_ref[...],
                            preferred_element_type=jnp.float32)

    @pl.when(k == pl.num_programs(1) - 1)
    def _():
        rst = (jnp.dot(feat_dst_ref[...], w1_ref[...],
                       preferred_element_type=jnp.float32)
               + jnp.dot(acc_ref[...], w2_ref[...],
                         preferred_element_type=jnp.float32))
        if activation is not None:
            rst = activation(rst)
        out_ref[...] = rst.astype(out_ref.dtype)


def graph_conv(adj, feat, wsum, w1, w2, *, activation=None,
               tile_n=512, tile_k=2048):
    """out = feat @ w1 + (adj @ feat - wsum·1ᵀ) @ w2, optionally activated.

    adj  : (N, N) dense adjacency (dst-major), A[v, u] = edge multiplicity,
           OR an already padded bf16 adjacency produced by pad_adjacency().
    feat : (N, f_in) node features
    wsum : (N, 1) per-destination sum of incoming edge weights
    w1,w2: (f_in, f_out)
    """
    N, f_in = feat.shape
    f_out = w1.shape[1]
    assert wsum.shape == (N, 1)
    assert w1.shape == (f_in, f_out) and w2.shape == (f_in, f_out)
    f32 = jnp.float32

    tile_n, tile_k = _resolve_tiles(N, tile_n, tile_k)
    f_out_pad = _round_up(f_out, 128)           # lane-dense output stores
    n_pad_rows = _round_up(N, tile_n)           # dst axis padded independently
    n_pad_cols = _round_up(N, tile_k)           # src axis padded independently
    grid = (n_pad_rows // tile_n, n_pad_cols // tile_k)

    # --- adjacency: reuse pre-padded bf16 copy if supplied ------------------
    if adj.dtype == jnp.bfloat16 and adj.shape == (n_pad_rows, n_pad_cols):
        adj_p = adj
    else:
        assert adj.shape == (N, N)
        adj_p = jnp.zeros((n_pad_rows, n_pad_cols), jnp.bfloat16)
        adj_p = adj_p.at[:N, :N].set(adj.astype(jnp.bfloat16))

    # --- small operands (O(N*f_in)); zero padding is semantically neutral ---
    feat_src = jnp.zeros((n_pad_cols, f_in), jnp.bfloat16)
    feat_src = feat_src.at[:N].set(feat.astype(jnp.bfloat16))
    feat_dst = jnp.zeros((n_pad_rows, f_in), f32)
    feat_dst = feat_dst.at[:N].set(feat.astype(f32))
    wsum_p = jnp.zeros((n_pad_rows, 1), f32).at[:N].set(wsum.astype(f32))
    w1_p = jnp.zeros((f_in, f_out_pad), f32).at[:, :f_out].set(w1.astype(f32))
    w2_p = jnp.zeros((f_in, f_out_pad), f32).at[:, :f_out].set(w2.astype(f32))

    # --- explicit VMEM budget (includes double buffering); assert it fits ---
    out_bytes = jnp.dtype(feat.dtype).itemsize
    f_in_lanes = _round_up(f_in, 128)
    blk_bytes = (
        2 * tile_n * tile_k * 2                  # adj block (bf16)
        + 2 * tile_k * f_in_lanes * 2            # feat_src block (bf16)
        + 2 * tile_n * f_in_lanes * 4            # feat_dst block (f32)
        + 2 * tile_n * 128 * 4                   # wsum block (lane-padded)
        + 2 * 2 * _round_up(f_in, 8) * f_out_pad * 4   # W1 + W2
        + 2 * tile_n * f_out_pad * out_bytes     # output block
        + tile_n * f_in_lanes * 4                # accumulator scratch
    )
    vmem_need = blk_bytes + (2 << 20)            # headroom for Mosaic scratch
    assert vmem_need <= (40 << 20), (
        f"tile_n={tile_n}, tile_k={tile_k} needs ~{vmem_need >> 20} MiB VMEM; "
        "reduce tile sizes (40 MiB ceiling keeps headroom on v7x's 64 MiB).")
    vmem_limit = int(max(vmem_need, 16 << 20))

    kernel = functools.partial(_graphconv_kernel, activation=activation)
    out = pl.pallas_call(
        kernel,
        out_shape=jax.ShapeDtypeStruct((n_pad_rows, f_out_pad), feat.dtype),
        grid_spec=pltpu.PrefetchScalarGridSpec(
            num_scalar_prefetch=0,
            grid=grid,                                  # (dst tiles, src tiles)
            in_specs=[
                pl.BlockSpec((tile_n, tile_k), lambda i, k: (i, k)),      # adj
                pl.BlockSpec((tile_k, f_in), lambda i, k: (k, 0)),        # feat src
                pl.BlockSpec((tile_n, f_in), lambda i, k: (i, 0)),        # feat dst
                pl.BlockSpec((tile_n, 1), lambda i, k: (i, 0)),           # wsum
                pl.BlockSpec((f_in, f_out_pad), lambda i, k: (0, 0)),     # W1
                pl.BlockSpec((f_in, f_out_pad), lambda i, k: (0, 0)),     # W2
            ],
            out_specs=pl.BlockSpec((tile_n, f_out_pad), lambda i, k: (i, 0)),
            scratch_shapes=[pltpu.VMEM((tile_n, f_in), jnp.float32)],
        ),
        compiler_params=pltpu.CompilerParams(
            dimension_semantics=("parallel", "arbitrary"),
            vmem_limit_bytes=vmem_limit),
    )(adj_p, feat_src, feat_dst, wsum_p, w1_p, w2_p)
    return out[:N, :f_out]


if __name__ == "__main__":
    # Small deterministic example: N nodes (non-tile-multiple to exercise
    # padding), E directed edges, features 32 -> 32.
    N, E, F_IN, F_OUT = 384, 2048, 32, 32
    key = jax.random.PRNGKey(0)
    k_feat, k_src, k_dst, k_ew, k_w1, k_w2 = jax.random.split(key, 6)

    feat = jax.random.normal(k_feat, (N, F_IN), dtype=jnp.float32)
    src = jax.random.randint(k_src, (E,), 0, N)
    dst = jax.random.randint(k_dst, (E,), 0, N)
    edge_weight = jax.random.uniform(k_ew, (E, 1), dtype=jnp.float32)

    # Dense adjacency (dst-major) and per-destination edge-weight sums (glue).
    adj = jnp.zeros((N, N), jnp.float32).at[dst, src].add(1.0)
    wsum = jnp.zeros((N, 1), jnp.float32).at[dst].add(edge_weight)

    # Xavier-uniform init (matches nn.init.xavier_uniform_, gain=1).
    bound = (6.0 / (F_IN + F_OUT)) ** 0.5
    w1 = jax.random.uniform(k_w1, (F_IN, F_OUT), jnp.float32, -bound, bound)
    w2 = jax.random.uniform(k_w2, (F_IN, F_OUT), jnp.float32, -bound, bound)

    # Small tiles for this small graph -> grid (3, 2): exercises both the
    # parallel dst axis and the K-reduction accumulator.  The padded bf16
    # adjacency is prepared once (hoisted) and reused by graph_conv.
    TN, TK = 128, 256
    adj_padded = pad_adjacency(adj, N, tile_n=TN, tile_k=TK)
    out = graph_conv(adj_padded, feat, wsum, w1, w2, activation=None,
                     tile_n=TN, tile_k=TK)
    out = jax.block_until_ready(out)

    # Pure-JAX reference of the same semantics (aggregation uses the same
    # bf16-rounded adjacency/features the kernel streams).
    adj_q = adj.astype(jnp.bfloat16).astype(jnp.float32)
    feat_q = feat.astype(jnp.bfloat16).astype(jnp.float32)
    agg_ref = jnp.dot(adj_q, feat_q, precision=jax.lax.Precision.HIGHEST) - wsum
    ref = (jnp.dot(feat, w1, precision=jax.lax.Precision.HIGHEST)
           + jnp.dot(agg_ref, w2, precision=jax.lax.Precision.HIGHEST))

    assert out.shape == (N, F_OUT)
    assert jnp.allclose(out, ref, rtol=1e-3, atol=1e-3), "mismatch vs reference"

    print("KERNEL_OK")
</pallas_src>

<mosaic_0001>
module attributes {stable_mosaic.version = 11 : i64} {
  func.func @_graphconv_kernel(%arg0: i32, %arg1: i32, %arg2: memref<128x256xbf16, #tpu.memory_space<vmem>>, %arg3: memref<256x32xbf16, #tpu.memory_space<vmem>>, %arg4: memref<128x32xf32, #tpu.memory_space<vmem>>, %arg5: memref<128x1xf32, #tpu.memory_space<vmem>>, %arg6: memref<32x128xf32, #tpu.memory_space<vmem>>, %arg7: memref<32x128xf32, #tpu.memory_space<vmem>>, %arg8: memref<128x128xf32, #tpu.memory_space<vmem>>, %arg9: memref<128x32xf32, #tpu.memory_space<vmem>>) attributes {dimension_semantics = [#tpu.dimension_semantics<parallel>, #tpu.dimension_semantics<arbitrary>], iteration_bounds = array<i64: 3, 2>, scalar_prefetch = 0 : i64, scratch_operands = 1 : i64, tpu.core_type = #tpu.core_type<tc>, window_params = [{transform_indices = @transform_0, window_bounds = array<i64: 128, 256>}, {transform_indices = @transform_1, window_bounds = array<i64: 256, 32>}, {transform_indices = @transform_2, window_bounds = array<i64: 128, 32>}, {transform_indices = @transform_3, window_bounds = array<i64: 128, 1>}, {pipeline_mode = #tpu.pipeline_mode<synchronous>, transform_indices = @transform_4, window_bounds = array<i64: 32, 128>}, {pipeline_mode = #tpu.pipeline_mode<synchronous>, transform_indices = @transform_5, window_bounds = array<i64: 32, 128>}, {transform_indices = @transform_6, window_bounds = array<i64: 128, 128>}]} {
    %c0_i32 = arith.constant 0 : i32
    %0 = arith.cmpi eq, %arg1, %c0_i32 : i32
    %1 = arith.extui %0 : i1 to i32
    %c0_i32_0 = arith.constant 0 : i32
    %2 = arith.cmpi ne, %1, %c0_i32_0 : i32
    scf.if %2 {
      %c0_9 = arith.constant 0 : index
      %c0_10 = arith.constant 0 : index
      %12 = vector.load %arg5[%c0_9, %c0_10] : memref<128x1xf32, #tpu.memory_space<vmem>>, vector<128x1xf32>
      %cst_11 = arith.constant 0.000000e+00 : f32
      %13 = vector.broadcast %cst_11 : f32 to vector<128x1xf32>
      %14 = arith.subf %13, %12 : vector<128x1xf32>
      %15 = vector.shape_cast %14 : vector<128x1xf32> to vector<128x1xf32>
      %16 = vector.broadcast %15 : vector<128x1xf32> to vector<128x32xf32>
      %c0_12 = arith.constant 0 : index
      %c0_13 = arith.constant 0 : index
      %17 = vector.load %arg9[%c0_12, %c0_13] : memref<128x32xf32, #tpu.memory_space<vmem>>, vector<128x32xf32>
      tpu.vector_store %arg9[%c0_12, %c0_13], %16 {strides = array<i32>} : memref<128x32xf32, #tpu.memory_space<vmem>>, vector<128x32xf32>,
    } else {
    }
    %c0 = arith.constant 0 : index
    %c0_1 = arith.constant 0 : index
    %3 = vector.load %arg9[%c0, %c0_1] : memref<128x32xf32, #tpu.memory_space<vmem>>, vector<128x32xf32>
    %c0_2 = arith.constant 0 : index
    %c0_3 = arith.constant 0 : index
    %4 = vector.load %arg2[%c0_2, %c0_3] : memref<128x256xbf16, #tpu.memory_space<vmem>>, vector<128x256xbf16>
    %c0_4 = arith.constant 0 : index
    %c0_5 = arith.constant 0 : index
    %5 = vector.load %arg3[%c0_4, %c0_5] : memref<256x32xbf16, #tpu.memory_space<vmem>>, vector<256x32xbf16>
    %cst = arith.constant dense<0.000000e+00> : vector<128x32xf32>
    %6 = tpu.matmul %4, %5, %cst {dimension_numbers = #tpu.dot_dimension_numbers<[1], [0], [0], [1], [0, 0, 1, 1], [], []>} : vector<128x256xbf16>, vector<256x32xbf16>, vector<128x32xf32> -> vector<128x32xf32>
    %7 = arith.addf %3, %6 : vector<128x32xf32>
    %c0_6 = arith.constant 0 : index
    %c0_7 = arith.constant 0 : index
    %8 = vector.load %arg9[%c0_6, %c0_7] : memref<128x32xf32, #tpu.memory_space<vmem>>, vector<128x32xf32>
    tpu.vector_store %arg9[%c0_6, %c0_7], %7 {strides = array<i32>} : memref<128x32xf32, #tpu.memory_space<vmem>>, vector<128x32xf32>,
    %c1_i32 = arith.constant 1 : i32
    %9 = arith.cmpi eq, %arg1, %c1_i32 : i32
    %10 = arith.extui %9 : i1 to i32
    %c0_i32_8 = arith.constant 0 : i32
    %11 = arith.cmpi ne, %10, %c0_i32_8 : i32
    scf.if %11 {
      %c0_9 = arith.constant 0 : index
      %c0_10 = arith.constant 0 : index
      %12 = vector.load %arg4[%c0_9, %c0_10] : memref<128x32xf32, #tpu.memory_space<vmem>>, vector<128x32xf32>
      %c0_11 = arith.constant 0 : index
      %c0_12 = arith.constant 0 : index
      %13 = vector.load %arg6[%c0_11, %c0_12] : memref<32x128xf32, #tpu.memory_space<vmem>>, vector<32x128xf32>
      %cst_13 = arith.constant dense<0.000000e+00> : vector<128x128xf32>
      %14 = tpu.matmul %12, %13, %cst_13 {dimension_numbers = #tpu.dot_dimension_numbers<[1], [0], [0], [1], [0, 0, 1, 1], [], []>} : vector<128x32xf32>, vector<32x128xf32>, vector<128x128xf32> -> vector<128x128xf32>
      %c0_14 = arith.constant 0 : index
      %c0_15 = arith.constant 0 : index
      %15 = vector.load %arg9[%c0_14, %c0_15] : memref<128x32xf32, #tpu.memory_space<vmem>>, vector<128x32xf32>
      %c0_16 = arith.constant 0 : index
      %c0_17 = arith.constant 0 : index
      %16 = vector.load %arg7[%c0_16, %c0_17] : memref<32x128xf32, #tpu.memory_space<vmem>>, vector<32x128xf32>
      %cst_18 = arith.constant dense<0.000000e+00> : vector<128x128xf32>
      %17 = tpu.matmul %15, %16, %cst_18 {dimension_numbers = #tpu.dot_dimension_numbers<[1], [0], [0], [1], [0, 0, 1, 1], [], []>} : vector<128x32xf32>, vector<32x128xf32>, vector<128x128xf32> -> vector<128x128xf32>
      %18 = arith.addf %14, %17 : vector<128x128xf32>
      %c0_19 = arith.constant 0 : index
      %c0_20 = arith.constant 0 : index
      %19 = vector.load %arg8[%c0_19, %c0_20] : memref<128x128xf32, #tpu.memory_space<vmem>>, vector<128x128xf32>
      tpu.vector_store %arg8[%c0_19, %c0_20], %18 {strides = array<i32>} : memref<128x128xf32, #tpu.memory_space<vmem>>, vector<128x128xf32>,
    } else {
    }
    return
  }
  func.func @transform_0(%arg0: i32, %arg1: i32) -> (i32, i32) {
    %c0_i32 = arith.constant 0 : i32
    return %arg0, %arg1 : i32, i32
  }
  func.func @transform_1(%arg0: i32, %arg1: i32) -> (i32, i32) {
    %c0_i32 = arith.constant 0 : i32
    %c0_i32_0 = arith.constant 0 : i32
    return %arg1, %c0_i32 : i32, i32
  }
  func.func @transform_2(%arg0: i32, %arg1: i32) -> (i32, i32) {
    %c0_i32 = arith.constant 0 : i32
    %c0_i32_0 = arith.constant 0 : i32
    return %arg0, %c0_i32 : i32, i32
  }
  func.func @transform_3(%arg0: i32, %arg1: i32) -> (i32, i32) {
    %c0_i32 = arith.constant 0 : i32
    %c0_i32_0 = arith.constant 0 : i32
    return %arg0, %c0_i32 : i32, i32
  }
  func.func @transform_4(%arg0: i32, %arg1: i32) -> (i32, i32) {
    %c0_i32 = arith.constant 0 : i32
    %c0_i32_0 = arith.constant 0 : i32
    %c0_i32_1 = arith.constant 0 : i32
    return %c0_i32, %c0_i32_0 : i32, i32
  }
  func.func @transform_5(%arg0: i32, %arg1: i32) -> (i32, i32) {
    %c0_i32 = arith.constant 0 : i32
    %c0_i32_0 = arith.constant 0 : i32
    %c0_i32_1 = arith.constant 0 : i32
    return %c0_i32, %c0_i32_0 : i32, i32
  }
  func.func @transform_6(%arg0: i32, %arg1: i32) -> (i32, i32) {
    %c0_i32 = arith.constant 0 : i32
    %c0_i32_0 = arith.constant 0 : i32
    return %arg0, %c0_i32 : i32, i32
  }
}

</mosaic_0001>

<bundles_post_ra>
// kernel: tpu_custom_call.1
= control target key start
LH: loop header
LB: loop body
LE: loop exit
PB: predicated region body
PF: predicated region fallthrough
CT: control target
= control target key end

     0   :  { %s2452_s0 = inlined_call_operand.vmem [shape: bf16[384,512], index: 0, kind: input, shape index: {}]   ;;  %s2453_s1 = inlined_call_operand.vmem [shape: bf16[512,32], index: 1, kind: input, shape index: {}]   ;;  %s2454_s2 = inlined_call_operand.vmem [shape: f32[384,32], index: 2, kind: input, shape index: {}]   ;;  %s2455_s3 = inlined_call_operand.vmem [shape: f32[384,1], index: 3, kind: input, shape index: {}]   ;;  %s2456_s4 = inlined_call_operand.vmem [shape: f32[32,128], index: 4, kind: input, shape index: {}]   ;;  %s2457_s5 = inlined_call_operand.vmem [shape: f32[32,128], index: 5, kind: input, shape index: {}]   ;;  %s2458_s6 = inlined_call_operand.hbm [shape: f32[384,128], index: 6, kind: output, shape index: {}]  }
   0x1   :  { %2465 = sst [smem:[#allocation14_spill]] %s2452_s0 }
   0x2   :  { %11 = vsyncpa [#allocation5], 0 }
   0x3   :  { %13 = vsyncpa [#allocation5 + $0x1], 0  ;;  %s2070_s21 = smov 0   ;;  %s2072_s22 = smov 0  }
   0x4   :  { %s2074_s23 = smov 0   ;;  %s2076_s24 = smov 0  }
   0x5   :  { %s2078_s25 = smov 0   ;;  %s2080_s26 = smov 0  }
   0x6   :  { %s2082_s27 = smov 0   ;;  %s2084_s28 = smov 0  }
   0x7   :  { %s2086_s29 = smov 0   ;;  %s2088_s30 = smov 0  }
   0x8 LB: > { %2466 = sst [smem:[#allocation7_spill]] %s2009_s25  ;;  %s1514_s7 = sadd.s32 4294967295, %s2029_s30   ;;  %s2029_s30 = sphi %s2088_s30, %s19_s30   ;;  %s2025_s29 = sphi %s2086_s29, %s2484_s29   ;;  %s2021_s28 = sphi %s2084_s28, %s2483_s28   ;;  %s2017_s27 = sphi %s2082_s27, %s2482_s27   ;;  %s2013_s26 = sphi %s2080_s26, %s2481_s26   ;;  %s2009_s25 = sphi %s2078_s25, %s2488_s25   ;;  %s2005_s24 = sphi %s2076_s24, %s2479_s24   ;;  %s2001_s23 = sphi %s2074_s23, %s2487_s23   ;;  %s1997_s22 = sphi %s2072_s22, %s2486_s22   ;;  %s1993_s21 = sphi %s2070_s21, %s2485_s21  }
   0x9   : > { %2467 = sst [smem:[#allocation8_spill]] %s2021_s28  ;;  %s1515_s8 = sadd.s32 4294967294, %s2029_s30  }
   0xa   : > { %2468 = sst [smem:[#allocation9_spill]] %s2025_s29  ;;  %s28_s9 = sadd.s32 1, %s2021_s28 }
   0xb   : > { %s31_s10 = sadd.s32 1, %s2025_s29  ;;  %p29_p0 = scmp.ge.s32.totalorder %s28_s9, 2 }
   0xc   : > { %s40_s11 = sadd.s32 1, %s2009_s25  ;;  %p47_p1 = scmp.ne.s32.totalorder %s2009_s25, %s2005_s24 }
   0xd   : > { %p48_p2 = scmp.eq.s32.totalorder %s2029_s30, 0  ;;  %s2490_s9 = smov (%p29_p0, %s28_s9), 0 }
   0xe   : > { %2469 = sst [smem:[#allocation10_spill]] %s2490_s9  ;;  %s2492_s10 = smov (!%p29_p0, %s31_s10), %s2025_s29 }
   0xf   : > { %s36_s12 = ssub.s32 %s2021_s28, %s2490_s9  ;;  %p2133_p3 = por %p48_p2, %p47_p1 }
  0x10   : > { %p33_p4 = scmp.ge.s32.totalorder %s2492_s10, 3  ;;  %s186_s14 = sadd.s32 1, %s2001_s23 }
  0x11   : > { %p196_p5 = scmp.ne.s32.totalorder %s2001_s23, %s1997_s22  ;;  %p197_p6 = scmp.eq.s32.totalorder %s1514_s7, 5 }
  0x12   : > { %s2494_s10 = smov (%p33_p4, %s2492_s10), 0  ;;  %p202_p8 = scmp.ne.s32.totalorder %s1997_s22, %s1993_s21 }
  0x13   : > { %2471 = sst [smem:[#allocation11_spill]] %s2494_s10  ;;  %p2142_p7 = por %p197_p6, %p196_p5 }
  0x14   : > { %s35_s16 = ssub.s32 %s2025_s29, %s2494_s10  ;;  %p203_p9 = scmp.eq.s32.totalorder %s1515_s8, 5 }
  0x15   : > { %s37_s17 = sor.u32 %s36_s12, %s35_s16  ;;  %p184_p10 = scmp.eq.s32.totalorder %s35_s16, 0 }
  0x16   : > { %p38_p11 = scmp.eq.s32.totalorder %s37_s17, 0  ;;  %p2150_p12 = por %p203_p9, %p202_p8 }
  0x17   : > { %s2155_s19 = scalar_select %p184_p10, %s2001_s23, %s186_s14  }
  0x18   : > { %s2158_s20 = scalar_select %p38_p11, %s2009_s25, %s40_s11  }
  0x19   : > { %2474 = sst [smem:[#allocation12_spill]] %s2155_s19  ;;  %p1517_p13 = scmp.ge.s32.totalorder %s2029_s30, 6 }
  0x1a   : > { %2475 = sst [smem:[#allocation13_spill]] %s2158_s20 }
  0x1b   : > { %225 = sbr.rel (%p1517_p13) target bundleno = 50 (0x32), region = 24 }
  0x20   : > { %228 = sbr.rel (!%p2133_p3) target bundleno = 50 (0x32), region = 28  ;;  %s230_s7 = sand.u32 (%p2133_p3), 1, %s2009_s25  }
  0x21   : > { %s1520_s8 = sshll.u32 (%p2133_p3), %s2021_s28, 1  ;;  %s1518_s12 = sshll.u32 (%p2133_p3), %s230_s7, 7 }
  0x22   : > { %s1603_s16 = sshll.u32 (%p2133_p3), %s2025_s29, 6  ;;  %s2476_s0 = sld [smem:[#allocation14_spill]] (%p2133_p3) }
  0x23   : > { %s236_s17 = sadd.s32 (%p2133_p3), %s1603_s16, %s1520_s8  ;;  %s232_s13 = scalar_lea.vmem (%p2133_p3), [#allocation3], %s1518_s12 }
  0x24   : > { %s1522_s10 = sshll.u32 (%p2133_p3), %s236_s17, 2 }
  0x28   : > { %s2169_s11 = scalar_lea.vmem %s2476_s0, %s1522_s10 }
  0x29   : > { %v297_v0 = vld [vmem:[%s2169_s11] sm:$0xff]  ;;  %v299_v1 = vld [vmem:[%s2169_s11 + $0x10] sm:$0xff] }
  0x2a   : > { %v301_v2 = vld [vmem:[%s2169_s11 + $0x20] sm:$0xff]  ;;  %298 = vst [vmem:[%s232_s13] sm:$0xff] %v297_v0  ;;  %300 = vst [vmem:[%s232_s13 + $0x8] sm:$0xff] %v299_v1  ;;  %v303_v3 = vld [vmem:[%s2169_s11 + $0x30] sm:$0xff] }
  0x2b   : > { %302 = vst [vmem:[%s232_s13 + $0x10] sm:$0xff] %v301_v2  ;;  %v305_v4 = vld [vmem:[%s2169_s11 + $0x40] sm:$0xff]  ;;  %v307_v5 = vld [vmem:[%s2169_s11 + $0x50] sm:$0xff]  ;;  %304 = vst [vmem:[%s232_s13 + $0x18] sm:$0xff] %v303_v3 }
  0x2c   : > { %306 = vst [vmem:[%s232_s13 + $0x20] sm:$0xff] %v305_v4  ;;  %308 = vst [vmem:[%s232_s13 + $0x28] sm:$0xff] %v307_v5  ;;  %v309_v6 = vld [vmem:[%s2169_s11 + $0x60] sm:$0xff]  ;;  %v311_v7 = vld [vmem:[%s2169_s11 + $0x70] sm:$0xff] }
  0x2d   : > { %v313_v8 = vld [vmem:[%s2169_s11 + $0x80] sm:$0xff]  ;;  %310 = vst [vmem:[%s232_s13 + $0x30] sm:$0xff] %v309_v6  ;;  %312 = vst [vmem:[%s232_s13 + $0x38] sm:$0xff] %v311_v7  ;;  %v315_v9 = vld [vmem:[%s2169_s11 + $0x90] sm:$0xff] }
  0x2e   : > { %314 = vst [vmem:[%s232_s13 + $0x40] sm:$0xff] %v313_v8  ;;  %v317_v10 = vld [vmem:[%s2169_s11 + $0xa0] sm:$0xff]  ;;  %v319_v11 = vld [vmem:[%s2169_s11 + $0xb0] sm:$0xff]  ;;  %316 = vst [vmem:[%s232_s13 + $0x48] sm:$0xff] %v315_v9 }
  0x2f   : > { %318 = vst [vmem:[%s232_s13 + $0x50] sm:$0xff] %v317_v10  ;;  %320 = vst [vmem:[%s232_s13 + $0x58] sm:$0xff] %v319_v11  ;;  %v321_v12 = vld [vmem:[%s2169_s11 + $0xc0] sm:$0xff]  ;;  %v323_v13 = vld [vmem:[%s2169_s11 + $0xd0] sm:$0xff] }
  0x30   : > { %v325_v14 = vld [vmem:[%s2169_s11 + $0xe0] sm:$0xff]  ;;  %322 = vst [vmem:[%s232_s13 + $0x60] sm:$0xff] %v321_v12  ;;  %324 = vst [vmem:[%s232_s13 + $0x68] sm:$0xff] %v323_v13  ;;  %v327_v15 = vld [vmem:[%s2169_s11 + $0xf0] sm:$0xff] }
  0x31   : > { %326 = vst [vmem:[%s232_s13 + $0x70] sm:$0xff] %v325_v14  ;;  %328 = vst [vmem:[%s232_s13 + $0x78] sm:$0xff] %v327_v15 }
  0x32 PF: > { %p1523_p0 = scmp.ge.s32.totalorder %s2029_s30, 1  ;;  %p360_p1 = scmp.lt.s32.totalorder %s2029_s30, 7 }
  0x34   : > { %p361_p2 = pnand %p1523_p0, %p360_p1 }
  0x35   : > { %s367_s9 = sand.u32 (!%p361_p2), 1, %s2005_s24   ;;  %s2463_s10 = sand.u32 (!%p361_p2), 1, %s1997_s22  }
  0x36   : > { %364 = sbr.rel (%p361_p2) target bundleno = 746 (0x2ea), region = 78  ;;  %s1524_s7 = sshll.u32 (!%p361_p2), %s367_s9, 7 }
  0x37   : > { %s1525_s8 = sshll.u32 (!%p361_p2), %s2463_s10, 7  ;;  %s1526_s12 = sshll.u32 (!%p361_p2), %s2013_s26, 5 }
  0x38   : > { %s1528_s16 = sshll.u32 (!%p361_p2), %s2017_s27, 4  ;;  %p414_p3 = scmp.lt.s32.totalorder (!%p361_p2), %s1526_s12, 63 }
  0x39   : > { %p420_p4 = scmp.lt.s32.totalorder (!%p361_p2), %s1528_s16, 47  ;;  %s2210_s25 = scalar_lea.vmem (!%p361_p2), [#allocation3], %s1524_s7 }
  0x3a   : > { %s2212_s19 = scalar_lea.vmem (!%p361_p2), [#allocation4], %s1525_s8  ;;  %p1532_p5 = scmp.ne.s32.totalorder (!%p361_p2), %s2013_s26, 0 }
  0x3b   : > { %s2496_s12 = smov (!%p414_p3, %s1526_s12), 63  ;;  %s2498_s16 = smov (!%p420_p4, %s1528_s16), 47 }
  0x3c   : > { %s1527_s17 = sshll.u32 %s2496_s12, 2  ;;  %s1529_s0 = sshll.u32 %s2498_s16, 3 }
  0x3d   : > { %s2198_s13 = scalar_lea.vmem %s2453_s1, %s1527_s17  ;;  %s2203_s24 = scalar_lea.vmem %s2454_s2, %s1529_s0 }
  0x3e   : > { %s2208_s20 = scalar_lea.vmem %s2455_s3, %s1529_s0  ;;  %436 = sbr.rel (%p1532_p5) target bundleno = 223 (0xdf), region = 86 }
  0x43   : > { %v439_v16 = vld [vmem:[%s2208_s20 + $0x10] sm:$0xff]  ;;  %v437_v17 = vld [vmem:[%s2208_s20] sm:$0xff]  ;;  %v440_v18 = vld [vmem:[%s2208_s20 + $0x18] sm:$0xff]  ;;  %v2031_v19 = vmov 0   ;;  %vm549_vm0 = vcmask 261120  }
  0x44   : > { %1880 = vset.pattern.permute.xlu1 %v2031_v19  ;;  %1879 = vset.pattern.permute.xlu0 %v2031_v19  ;;  %v455_v20 = vsub.f32 0.0, %v439_v16  ;;  %v453_v21 = vsub.f32 0.0, %v437_v17  ;;  %v438_v22 = vld [vmem:[%s2208_s20 + $0x8] sm:$0xff]  ;;  %v456_v23 = vsub.f32 0.0, %v440_v18  ;;  %v441_v26 = vld [vmem:[%s2208_s20 + $0x20] sm:$0xff]  ;;  %v444_v29 = vld [vmem:[%s2208_s20 + $0x38] sm:$0xff] }
  0x45   : > { %v454_v24 = vsub.f32 0.0, %v438_v22  ;;  %v442_v25 = vld [vmem:[%s2208_s20 + $0x28] sm:$0xff]  ;;  %v457_v28 = vsub.f32 0.0, %v441_v26  ;;  %v443_v30 = vld [vmem:[%s2208_s20 + $0x30] sm:$0xff]  ;;  %v460_v31 = vsub.f32 0.0, %v444_v29  ;;  %v445_v34 = vld [vmem:[%s2208_s20 + $0x40] sm:$0xff] }
  0x46   : > { %481 = vperm.xlu1 %1880, %v455_v20   ;;  %471 = vperm.xlu0 %1879, %v453_v21   ;;  %v458_v27 = vsub.f32 0.0, %v442_v25  ;;  %v459_v32 = vsub.f32 0.0, %v443_v30  ;;  %v446_v33 = vld [vmem:[%s2208_s20 + $0x48] sm:$0xff]  ;;  %v461_v36 = vsub.f32 0.0, %v445_v34  ;;  %v448_v37 = vld [vmem:[%s2208_s20 + $0x58] sm:$0xff]  ;;  %v447_v38 = vld [vmem:[%s2208_s20 + $0x50] sm:$0xff] }
  0x47   : > { %v462_v35 = vsub.f32 0.0, %v446_v33  ;;  %v464_v39 = vsub.f32 0.0, %v448_v37  ;;  %v463_v40 = vsub.f32 0.0, %v447_v38  ;;  %v450_v41 = vld [vmem:[%s2208_s20 + $0x68] sm:$0xff]  ;;  %v449_v42 = vld [vmem:[%s2208_s20 + $0x60] sm:$0xff]  ;;  %v452_v45 = vld [vmem:[%s2208_s20 + $0x78] sm:$0xff] }
  0x48   : > { %v466_v43 = vsub.f32 0.0, %v450_v41  ;;  %v465_v44 = vsub.f32 0.0, %v449_v42  ;;  %v451_v46 = vld [vmem:[%s2208_s20 + $0x70] sm:$0xff]  ;;  %v468_v47 = vsub.f32 0.0, %v452_v45 }
  0x49   : > { %v467_v48 = vsub.f32 0.0, %v451_v46 }
  0x4a   : > { %486 = vperm.xlu1 %1880, %v456_v23   ;;  %476 = vperm.xlu0 %1879, %v454_v24  }
  0x4e   : > { %496 = vperm.xlu1 %1880, %v458_v27   ;;  %491 = vperm.xlu0 %1879, %v457_v28  }
  0x52   : > { %506 = vperm.xlu1 %1880, %v460_v31   ;;  %501 = vperm.xlu0 %1879, %v459_v32  }
  0x56   : > { %516 = vperm.xlu1 %1880, %v462_v35   ;;  %511 = vperm.xlu0 %1879, %v461_v36  }
  0x5a   : > { %526 = vperm.xlu1 %1880, %v464_v39   ;;  %521 = vperm.xlu0 %1879, %v463_v40  }
  0x5e   : > { %536 = vperm.xlu1 %1880, %v466_v43   ;;  %531 = vperm.xlu0 %1879, %v465_v44  }
  0x62   : > { %546 = vperm.xlu1 %1880, %v468_v47   ;;  %541 = vperm.xlu0 %1879, %v467_v48  }
  0xc1   : > { %v482_v49 = vpop.permute.xlu1 %481  ;;  %v472_v50 = vpop.permute.xlu0 %471 }
  0xc2   : > { %552 = vst.msk [vmem:[#allocation2 + $0x10] sm:$0xff] %vm549_vm0, %v482_v49  ;;  %550 = vst.msk [vmem:[#allocation2] sm:$0xff] %vm549_vm0, %v472_v50 }
  0xc5   : > { %v487_v51 = vpop.permute.xlu1 %486  ;;  %v477_v52 = vpop.permute.xlu0 %476 }
  0xc6   : > { %553 = vst.msk [vmem:[#allocation2 + $0x18] sm:$0xff] %vm549_vm0, %v487_v51  ;;  %551 = vst.msk [vmem:[#allocation2 + $0x8] sm:$0xff] %vm549_vm0, %v477_v52 }
  0xc9   : > { %v497_v53 = vpop.permute.xlu1 %496  ;;  %v492_v54 = vpop.permute.xlu0 %491 }
  0xca   : > { %555 = vst.msk [vmem:[#allocation2 + $0x28] sm:$0xff] %vm549_vm0, %v497_v53  ;;  %554 = vst.msk [vmem:[#allocation2 + $0x20] sm:$0xff] %vm549_vm0, %v492_v54 }
  0xcd   : > { %v507_v55 = vpop.permute.xlu1 %506  ;;  %v502_v56 = vpop.permute.xlu0 %501 }
  0xce   : > { %557 = vst.msk [vmem:[#allocation2 + $0x38] sm:$0xff] %vm549_vm0, %v507_v55  ;;  %556 = vst.msk [vmem:[#allocation2 + $0x30] sm:$0xff] %vm549_vm0, %v502_v56 }
  0xd1   : > { %v517_v57 = vpop.permute.xlu1 %516  ;;  %v512_v58 = vpop.permute.xlu0 %511 }
  0xd2   : > { %559 = vst.msk [vmem:[#allocation2 + $0x48] sm:$0xff] %vm549_vm0, %v517_v57  ;;  %558 = vst.msk [vmem:[#allocation2 + $0x40] sm:$0xff] %vm549_vm0, %v512_v58 }
  0xd5   : > { %v527_v59 = vpop.permute.xlu1 %526  ;;  %v522_v60 = vpop.permute.xlu0 %521 }
  0xd6   : > { %561 = vst.msk [vmem:[#allocation2 + $0x58] sm:$0xff] %vm549_vm0, %v527_v59  ;;  %560 = vst.msk [vmem:[#allocation2 + $0x50] sm:$0xff] %vm549_vm0, %v522_v60 }
  0xd9   : > { %v537_v61 = vpop.permute.xlu1 %536  ;;  %v532_v62 = vpop.permute.xlu0 %531 }
  0xda   : > { %563 = vst.msk [vmem:[#allocation2 + $0x68] sm:$0xff] %vm549_vm0, %v537_v61  ;;  %562 = vst.msk [vmem:[#allocation2 + $0x60] sm:$0xff] %vm549_vm0, %v532_v62 }
  0xdd   : > { %v547_v63 = vpop.permute.xlu1 %546  ;;  %v542_v0 = vpop.permute.xlu0 %541 }
  0xde   : > { %565 = vst.msk [vmem:[#allocation2 + $0x78] sm:$0xff] %vm549_vm0, %v547_v63  ;;  %564 = vst.msk [vmem:[#allocation2 + $0x70] sm:$0xff] %vm549_vm0, %v542_v0 }
  0xdf PF: > { %v1881_v1 = vld [vmem:[%s2198_s13 + $0x78] sm:$0xff]   ;;  %v1883_v3 = vld [vmem:[%s2198_s13 + $0x70] sm:$0xff]   ;;  %v1885_v5 = vld [vmem:[%s2198_s13 + $0x68] sm:$0xff]   ;;  %vm919_vm1 = vcmask 261120   ;;  %p1565_p6 = scmp.ne.s32.totalorder %s2013_s26, 1 }
  0xe0   : > { %v1882_v2 = vld [vmem:[%s2198_s13 + $0x38] sm:$0xff]   ;;  %1605 = vmatprep.subr.bf16.mxu0 %v1881_v1  ;;  %1773 = vmatprep.subr.bf16.mxu1 %v1881_v1  ;;  %v1884_v4 = vld [vmem:[%s2198_s13 + $0x30] sm:$0xff]   ;;  %v1886_v6 = vld [vmem:[%s2198_s13 + $0x28] sm:$0xff]  }
  0xe1   : > { %1606 = vmatpush3.bf16.msra.mxu0 %v1882_v2  ;;  %1781 = vmatpush3.bf16.msra.mxu1 %v1882_v2  ;;  %v1887_v7 = vld [vmem:[%s2198_s13 + $0x60] sm:$0xff]   ;;  %v1889_v9 = vld [vmem:[%s2198_s13 + $0x58] sm:$0xff]   ;;  %v1891_v11 = vld [vmem:[%s2198_s13 + $0x50] sm:$0xff]  }
  0xe2   : > { %1607 = vmatprep.subr.bf16.mxu0 %v1883_v3  ;;  %1774 = vmatprep.subr.bf16.mxu1 %v1883_v3  ;;  %v1888_v8 = vld [vmem:[%s2198_s13 + $0x20] sm:$0xff]   ;;  %v1890_v10 = vld [vmem:[%s2198_s13 + $0x18] sm:$0xff]   ;;  %v1892_v14 = vld [vmem:[%s2198_s13 + $0x10] sm:$0xff]  }
  0xe3   : > { %v1899_v12 = vld [vmem:[%s2210_s25 + $0x4] ss:$8 sps:$4 sm:$0xff]   ;;  %v1897_v19 = vld [vmem:[%s2210_s25] ss:$8 sps:$4 sm:$0xff]   ;;  %v1903_v21 = vld [vmem:[%s2210_s25 + $0x14] ss:$8 sps:$4 sm:$0xff]  }
  0xe4   : > { %v1902_v13 = vld [vmem:[%s2210_s25 + $0x44] ss:$8 sps:$4 sm:$0xff]   ;;  %838 = vmatprep.mubr.bf16.mxu0 %v1899_v12  ;;  %v1900_v20 = vld [vmem:[%s2210_s25 + $0x40] ss:$8 sps:$4 sm:$0xff]   ;;  %v1905_v22 = vld [vmem:[%s2210_s25 + $0x54] ss:$8 sps:$4 sm:$0xff]  }
  0xe5   : > { %1608 = vmatpush3.bf16.msra.mxu0 %v1884_v4  ;;  %1782 = vmatpush3.bf16.msra.mxu1 %v1884_v4  ;;  %v1893_v15 = vld [vmem:[%s2198_s13 + $0x48] sm:$0xff]   ;;  %v1895_v17 = vld [vmem:[%s2198_s13 + $0x40] sm:$0xff]   ;;  %v1907_v23 = vld [vmem:[%s2210_s25 + $0x10] ss:$8 sps:$4 sm:$0xff]  }
  0xe6   : > { %1609 = vmatprep.subr.bf16.mxu0 %v1885_v5  ;;  %1775 = vmatprep.subr.bf16.mxu1 %v1885_v5  ;;  %v1894_v16 = vld [vmem:[%s2198_s13 + $0x8] sm:$0xff]   ;;  %v1896_v18 = vld [vmem:[%s2198_s13] sm:$0xff]   ;;  %v1908_v24 = vld [vmem:[%s2210_s25 + $0x50] ss:$8 sps:$4 sm:$0xff]  }
  0xe7   : > { %870 = vmatprep.mubr.bf16.mxu1 %v1902_v13  ;;  %v1909_v25 = vld [vmem:[%s2210_s25 + $0x24] ss:$8 sps:$4 sm:$0xff]   ;;  %v1913_v27 = vld [vmem:[%s2210_s25 + $0x20] ss:$8 sps:$4 sm:$0xff]   ;;  %v1915_v29 = vld [vmem:[%s2210_s25 + $0x34] ss:$8 sps:$4 sm:$0xff]  }
  0xe8   : > { %v1911_v26 = vld [vmem:[%s2210_s25 + $0x64] ss:$8 sps:$4 sm:$0xff]   ;;  %v1914_v28 = vld [vmem:[%s2210_s25 + $0x60] ss:$8 sps:$4 sm:$0xff]   ;;  %v1917_v30 = vld [vmem:[%s2210_s25 + $0x74] ss:$8 sps:$4 sm:$0xff]  }
  0xe9   : > { %1610 = vmatpush3.bf16.msra.mxu0 %v1886_v6  ;;  %1783 = vmatpush3.bf16.msra.mxu1 %v1886_v6  ;;  %v1919_v31 = vld [vmem:[%s2210_s25 + $0x30] ss:$8 sps:$4 sm:$0xff]   ;;  %v566_v35 = vld [vmem:[#allocation2] sm:$0xff]  ;;  %v567_v45 = vld [vmem:[#allocation2 + $0x8] sm:$0xff] }
  0xea   : > { %1611 = vmatprep.subr.bf16.mxu0 %v1887_v7  ;;  %1776 = vmatprep.subr.bf16.mxu1 %v1887_v7  ;;  %v1920_v32 = vld [vmem:[%s2210_s25 + $0x70] ss:$8 sps:$4 sm:$0xff]   ;;  %v574_v37 = vld [vmem:[#allocation2 + $0x40] sm:$0xff]  ;;  %v575_v47 = vld [vmem:[#allocation2 + $0x48] sm:$0xff] }
  0xeb   : > { %v568_v55 = vld [vmem:[#allocation2 + $0x10] sm:$0xff]  ;;  %v569_v1 = vld [vmem:[#allocation2 + $0x18] sm:$0xff]  ;;  %v578_v13 = vld [vmem:[#allocation2 + $0x60] sm:$0xff] }
  0xec   : > { %v576_v57 = vld [vmem:[#allocation2 + $0x50] sm:$0xff]  ;;  %v577_v3 = vld [vmem:[#allocation2 + $0x58] sm:$0xff] }
  0xed   : > { %1612 = vmatpush3.bf16.msra.mxu0 %v1888_v8  ;;  %1784 = vmatpush3.bf16.msra.mxu1 %v1888_v8 }
  0xee   : > { %1613 = vmatprep.subr.bf16.mxu0 %v1889_v9  ;;  %1777 = vmatprep.subr.bf16.mxu1 %v1889_v9 }
  0xf1   : > { %1614 = vmatpush3.bf16.msra.mxu0 %v1890_v10  ;;  %1785 = vmatpush3.bf16.msra.mxu1 %v1890_v10 }
  0xf2   : > { %1615 = vmatprep.subr.bf16.mxu0 %v1891_v11  ;;  %1778 = vmatprep.subr.bf16.mxu1 %v1891_v11  ;;  %v570_v11 = vld [vmem:[#allocation2 + $0x20] sm:$0xff] }
  0xf5   : > { %1616 = vmatpush3.bf16.msra.mxu0 %v1892_v14  ;;  %1786 = vmatpush3.bf16.msra.mxu1 %v1892_v14 }
  0xf6   : > { %1617 = vmatprep.subr.bf16.mxu0 %v1893_v15  ;;  %1779 = vmatprep.subr.bf16.mxu1 %v1893_v15 }
  0xf9   : > { %1618 = vmatpush3.bf16.msra.mxu0 %v1894_v16  ;;  %1787 = vmatpush3.bf16.msra.mxu1 %v1894_v16 }
  0xfa   : > { %1619 = vmatprep.subr.bf16.mxu0 %v1895_v17  ;;  %1780 = vmatprep.subr.bf16.mxu1 %v1895_v17 }
  0xfd   : > { %1620 = vmatpush3.bf16.msra.mxu0 %v1896_v18  ;;  %1788 = vmatpush3.bf16.msra.mxu1 %v1896_v18 }
 0x100   : > { %839 = vmatmul.mubr.bf16.vlgmr.msra.gmra.mxu0 %v1897_v19  ;;  %871 = vmatmul.mubr.bf16.vlgmr.msra.gmra.mxu1 %v1900_v20 }
 0x101   : > { %846 = vmatprep.mubr.bf16.mxu0 %v1903_v21  ;;  %878 = vmatprep.mubr.bf16.mxu1 %v1905_v22  ;;  %v571_v21 = vld [vmem:[#allocation2 + $0x28] sm:$0xff] }
 0x108   : > { %847 = vmatmul.mubr.bf16.gmra.mxu0 %v1907_v23  ;;  %879 = vmatmul.mubr.bf16.gmra.mxu1 %v1908_v24  ;;  %v579_v23 = vld [vmem:[#allocation2 + $0x68] sm:$0xff] }
 0x109   : > { %854 = vmatprep.mubr.bf16.mxu0 %v1909_v25  ;;  %886 = vmatprep.mubr.bf16.mxu1 %v1911_v26 }
 0x110   : > { %855 = vmatmul.mubr.bf16.gmra.mxu0 %v1913_v27  ;;  %887 = vmatmul.mubr.bf16.gmra.mxu1 %v1914_v28 }
 0x111   : > { %862 = vmatprep.mubr.bf16.mxu0 %v1915_v29  ;;  %894 = vmatprep.mubr.bf16.mxu1 %v1917_v30 }
 0x118   : > { %863 = vmatmul.mubr.bf16.gmra.mxu0 %v1919_v31  ;;  %895 = vmatmul.mubr.bf16.gmra.mxu1 %v1920_v32  ;;  %v572_v31 = vld [vmem:[#allocation2 + $0x30] sm:$0xff] }
 0x1c0   : > { %v1621_v33 = vpop.f32.mrf.mxu0  ;;  %v1645_v34 = vpop.f32.mrf.mxu1 }
 0x1c2   : > { %v1622_v36 = vpop.f32.mrf.mxu0  ;;  %v1646_v38 = vpop.f32.mrf.mxu1 }
 0x1c3   : > { %v1623_v39 = vadd.f32 %v1622_v36, %v1621_v33  ;;  %v1647_v40 = vadd.f32 %v1646_v38, %v1645_v34  ;;  %v580_v33 = vld [vmem:[#allocation2 + $0x70] sm:$0xff] }
 0x1c4   : > { %v1624_v41 = vpop.f32.mrf.mxu0  ;;  %v1648_v42 = vpop.f32.mrf.mxu1 }
 0x1c5   : > { %v903_v43 = vadd.f32 %v1623_v39, %v566_v35  ;;  %v911_v44 = vadd.f32 %v1647_v40, %v574_v37 }
 0x1c6   : > { %v1625_v46 = vpop.f32.mrf.mxu0  ;;  %v1649_v48 = vpop.f32.mrf.mxu1 }
 0x1c7   : > { %920 = vst.msk [vmem:[#allocation2] sm:$0xff] %vm919_vm1, %v903_v43  ;;  %928 = vst.msk [vmem:[#allocation2 + $0x40] sm:$0xff] %vm919_vm1, %v911_v44  ;;  %v1626_v49 = vadd.f32 %v1625_v46, %v1624_v41  ;;  %v1650_v50 = vadd.f32 %v1649_v48, %v1648_v42  ;;  %v573_v41 = vld [vmem:[#allocation2 + $0x38] sm:$0xff] }
 0x1c8   : > { %v1627_v51 = vpop.f32.mrf.mxu0  ;;  %v1651_v52 = vpop.f32.mrf.mxu1  ;;  %v581_v43 = vld [vmem:[#allocation2 + $0x78] sm:$0xff] }
 0x1c9   : > { %v904_v53 = vadd.f32 %v1626_v49, %v567_v45  ;;  %v912_v54 = vadd.f32 %v1650_v50, %v575_v47 }
 0x1ca   : > { %v1628_v56 = vpop.f32.mrf.mxu0  ;;  %v1652_v58 = vpop.f32.mrf.mxu1 }
 0x1cb   : > { %921 = vst.msk [vmem:[#allocation2 + $0x8] sm:$0xff] %vm919_vm1, %v904_v53  ;;  %929 = vst.msk [vmem:[#allocation2 + $0x48] sm:$0xff] %vm919_vm1, %v912_v54  ;;  %v1629_v59 = vadd.f32 %v1628_v56, %v1627_v51  ;;  %v1653_v60 = vadd.f32 %v1652_v58, %v1651_v52 }
 0x1cc   : > { %v1630_v61 = vpop.f32.mrf.mxu0  ;;  %v1654_v62 = vpop.f32.mrf.mxu1 }
 0x1cd   : > { %v905_v63 = vadd.f32 %v1629_v59, %v568_v55  ;;  %v913_v0 = vadd.f32 %v1653_v60, %v576_v57 }
 0x1ce   : > { %v1631_v2 = vpop.f32.mrf.mxu0  ;;  %v1655_v4 = vpop.f32.mrf.mxu1 }
 0x1cf   : > { %922 = vst.msk [vmem:[#allocation2 + $0x10] sm:$0xff] %vm919_vm1, %v905_v63  ;;  %930 = vst.msk [vmem:[#allocation2 + $0x50] sm:$0xff] %vm919_vm1, %v913_v0  ;;  %v1632_v5 = vadd.f32 %v1631_v2, %v1630_v61  ;;  %v1656_v6 = vadd.f32 %v1655_v4, %v1654_v62 }
 0x1d0   : > { %v1633_v7 = vpop.f32.mrf.mxu0  ;;  %v1657_v8 = vpop.f32.mrf.mxu1 }
 0x1d1   : > { %v906_v9 = vadd.f32 %v1632_v5, %v569_v1  ;;  %v914_v10 = vadd.f32 %v1656_v6, %v577_v3 }
 0x1d2   : > { %v1634_v12 = vpop.f32.mrf.mxu0  ;;  %v1658_v14 = vpop.f32.mrf.mxu1 }
 0x1d3   : > { %923 = vst.msk [vmem:[#allocation2 + $0x18] sm:$0xff] %vm919_vm1, %v906_v9  ;;  %931 = vst.msk [vmem:[#allocation2 + $0x58] sm:$0xff] %vm919_vm1, %v914_v10  ;;  %v1635_v15 = vadd.f32 %v1634_v12, %v1633_v7  ;;  %v1659_v16 = vadd.f32 %v1658_v14, %v1657_v8 }
 0x1d4   : > { %v1636_v17 = vpop.f32.mrf.mxu0  ;;  %v1660_v18 = vpop.f32.mrf.mxu1 }
 0x1d5   : > { %v907_v19 = vadd.f32 %v1635_v15, %v570_v11  ;;  %v915_v20 = vadd.f32 %v1659_v16, %v578_v13 }
 0x1d6   : > { %v1637_v22 = vpop.f32.mrf.mxu0  ;;  %v1661_v24 = vpop.f32.mrf.mxu1 }
 0x1d7   : > { %924 = vst.msk [vmem:[#allocation2 + $0x20] sm:$0xff] %vm919_vm1, %v907_v19  ;;  %932 = vst.msk [vmem:[#allocation2 + $0x60] sm:$0xff] %vm919_vm1, %v915_v20  ;;  %v1638_v25 = vadd.f32 %v1637_v22, %v1636_v17  ;;  %v1662_v26 = vadd.f32 %v1661_v24, %v1660_v18 }
 0x1d8   : > { %v1639_v27 = vpop.f32.mrf.mxu0  ;;  %v1663_v28 = vpop.f32.mrf.mxu1 }
 0x1d9   : > { %v908_v29 = vadd.f32 %v1638_v25, %v571_v21  ;;  %v916_v30 = vadd.f32 %v1662_v26, %v579_v23 }
 0x1da   : > { %v1640_v32 = vpop.f32.mrf.mxu0  ;;  %v1664_v34 = vpop.f32.mrf.mxu1 }
 0x1db   : > { %925 = vst.msk [vmem:[#allocation2 + $0x28] sm:$0xff] %vm919_vm1, %v908_v29  ;;  %933 = vst.msk [vmem:[#allocation2 + $0x68] sm:$0xff] %vm919_vm1, %v916_v30  ;;  %v1641_v35 = vadd.f32 %v1640_v32, %v1639_v27  ;;  %v1665_v36 = vadd.f32 %v1664_v34, %v1663_v28 }
 0x1dc   : > { %v1642_v37 = vpop.f32.mrf.mxu0  ;;  %v1666_v38 = vpop.f32.mrf.mxu1 }
 0x1dd   : > { %v909_v39 = vadd.f32 %v1641_v35, %v572_v31  ;;  %v917_v40 = vadd.f32 %v1665_v36, %v580_v33 }
 0x1de   : > { %v1643_v42 = vpop.f32.mrf.mxu0  ;;  %v1667_v44 = vpop.f32.mrf.mxu1 }
 0x1df   : > { %926 = vst.msk [vmem:[#allocation2 + $0x30] sm:$0xff] %vm919_vm1, %v909_v39  ;;  %934 = vst.msk [vmem:[#allocation2 + $0x70] sm:$0xff] %vm919_vm1, %v917_v40  ;;  %v1644_v45 = vadd.f32 %v1643_v42, %v1642_v37  ;;  %v1668_v46 = vadd.f32 %v1667_v44, %v1666_v38  ;;  %939 = sbr.rel (%p1565_p6) target bundleno = 721 (0x2d1), region = 90 }
 0x1e1   : > { %v910_v47 = vadd.f32 %v1644_v45, %v573_v41  ;;  %v918_v48 = vadd.f32 %v1668_v46, %v581_v43 }
 0x1e3   : > { %927 = vst.msk [vmem:[#allocation2 + $0x38] sm:$0xff] %vm919_vm1, %v910_v47  ;;  %935 = vst.msk [vmem:[#allocation2 + $0x78] sm:$0xff] %vm919_vm1, %v918_v48 }
 0x1e4   : > { %v979_v49 = vld [vmem:[%s2457_s5 + $0x18] sm:$0xff]  ;;  %v978_v51 = vld [vmem:[%s2457_s5 + $0x10] sm:$0xff]  ;;  %v977_v53 = vld [vmem:[%s2457_s5 + $0x8] sm:$0xff] }
 0x1e5   : > { %v959_v50 = vld [vmem:[%s2456_s4 + $0x18] sm:$0xff]  ;;  %1709 = vmatprep.subr.mxu0 %v979_v49  ;;  %v958_v52 = vld [vmem:[%s2456_s4 + $0x10] sm:$0xff]  ;;  %v957_v54 = vld [vmem:[%s2456_s4 + $0x8] sm:$0xff] }
 0x1e6   : > { %1741 = vmatprep.subr.mxu1 %v959_v50  ;;  %1710 = vmatpush3.msra.mxu0 %v979_v49  ;;  %v976_v55 = vld [vmem:[%s2457_s5] sm:$0xff]  ;;  %v961_v59 = vld [vmem:[#allocation2 + $0x8] sm:$0xff]  ;;  %v962_v61 = vld [vmem:[#allocation2 + $0x10] sm:$0xff] }
 0x1e7   : > { %1742 = vmatpush3.msra.mxu1 %v959_v50  ;;  %1711 = vmatprep.subr.mxu0 %v978_v51  ;;  %v956_v56 = vld [vmem:[%s2456_s4] sm:$0xff]  ;;  %v941_v60 = vld [vmem:[%s2203_s24 + $0x8] sm:$0xff]  ;;  %v942_v62 = vld [vmem:[%s2203_s24 + $0x10] sm:$0xff] }
 0x1e8   : > { %1743 = vmatprep.subr.mxu1 %v958_v52  ;;  %1712 = vmatpush3.msra.mxu0 %v978_v51  ;;  %v960_v57 = vld [vmem:[#allocation2] sm:$0xff]  ;;  %v963_v63 = vld [vmem:[#allocation2 + $0x18] sm:$0xff]  ;;  %v965_v3 = vld [vmem:[#allocation2 + $0x28] sm:$0xff] }
 0x1e9   : > { %1744 = vmatpush3.msra.mxu1 %v958_v52  ;;  %1713 = vmatprep.subr.mxu0 %v977_v53  ;;  %v940_v58 = vld [vmem:[%s2203_s24] sm:$0xff]  ;;  %v943_v0 = vld [vmem:[%s2203_s24 + $0x18] sm:$0xff]  ;;  %v945_v4 = vld [vmem:[%s2203_s24 + $0x28] sm:$0xff] }
 0x1ea   : > { %1745 = vmatprep.subr.mxu1 %v957_v54  ;;  %1714 = vmatpush3.msra.mxu0 %v977_v53  ;;  %v964_v1 = vld [vmem:[#allocation2 + $0x20] sm:$0xff]  ;;  %v966_v5 = vld [vmem:[#allocation2 + $0x30] sm:$0xff]  ;;  %v967_v7 = vld [vmem:[#allocation2 + $0x38] sm:$0xff] }
 0x1eb   : > { %1746 = vmatpush3.msra.mxu1 %v957_v54  ;;  %1715 = vmatprep.subr.mxu0 %v976_v55  ;;  %v944_v2 = vld [vmem:[%s2203_s24 + $0x20] sm:$0xff]  ;;  %v946_v6 = vld [vmem:[%s2203_s24 + $0x30] sm:$0xff]  ;;  %v947_v8 = vld [vmem:[%s2203_s24 + $0x38] sm:$0xff] }
 0x1ec   : > { %1747 = vmatprep.subr.mxu1 %v956_v56  ;;  %1716 = vmatpush3.msra.mxu0 %v976_v55  ;;  %v968_v9 = vld [vmem:[#allocation2 + $0x40] sm:$0xff]  ;;  %v969_v11 = vld [vmem:[#allocation2 + $0x48] sm:$0xff]  ;;  %v970_v13 = vld [vmem:[#allocation2 + $0x50] sm:$0xff] }
 0x1ed   : > { %1717 = vmatprep.mubr.msk.f32.mxu0 %vm919_vm1, %v960_v57  ;;  %1748 = vmatpush3.msra.mxu1 %v956_v56  ;;  %v948_v10 = vld [vmem:[%s2203_s24 + $0x40] sm:$0xff]  ;;  %v949_v12 = vld [vmem:[%s2203_s24 + $0x48] sm:$0xff]  ;;  %v950_v14 = vld [vmem:[%s2203_s24 + $0x50] sm:$0xff] }
 0x1ee   : > { %1749 = vmatprep.mubr.msk.f32.mxu1 %vm919_vm1, %v940_v58  ;;  %1718 = vmatmul.mubr.msk.f32.vlgmr.msra.gmra.mxu0 %vm919_vm1, %v961_v59  ;;  %v971_v15 = vld [vmem:[#allocation2 + $0x58] sm:$0xff]  ;;  %v972_v17 = vld [vmem:[#allocation2 + $0x60] sm:$0xff]  ;;  %v973_v19 = vld [vmem:[#allocation2 + $0x68] sm:$0xff] }
 0x1ef   : > { %1750 = vmatmul.mubr.msk.f32.vlgmr.msra.gmra.mxu1 %vm919_vm1, %v941_v60  ;;  %1720 = vmatprep.mubr.msk.f32.mxu0 %vm919_vm1, %v962_v61  ;;  %v951_v16 = vld [vmem:[%s2203_s24 + $0x58] sm:$0xff]  ;;  %v952_v18 = vld [vmem:[%s2203_s24 + $0x60] sm:$0xff]  ;;  %v953_v20 = vld [vmem:[%s2203_s24 + $0x68] sm:$0xff] }
 0x1f0   : > { %1752 = vmatprep.mubr.msk.f32.mxu1 %vm919_vm1, %v942_v62  ;;  %v974_v21 = vld [vmem:[#allocation2 + $0x70] sm:$0xff]  ;;  %v975_v23 = vld [vmem:[#allocation2 + $0x78] sm:$0xff] }
 0x1f1   : > { %v954_v22 = vld [vmem:[%s2203_s24 + $0x70] sm:$0xff]  ;;  %v955_v24 = vld [vmem:[%s2203_s24 + $0x78] sm:$0xff] }
 0x1f2   : > { %1721 = vmatmul.mubr.msk.f32.gmra.mxu0 %vm919_vm1, %v963_v63 }
 0x1f3   : > { %1753 = vmatmul.mubr.msk.f32.gmra.mxu1 %vm919_vm1, %v943_v0  ;;  %1723 = vmatprep.mubr.msk.f32.mxu0 %vm919_vm1, %v964_v1 }
 0x1f4   : > { %1755 = vmatprep.mubr.msk.f32.mxu1 %vm919_vm1, %v944_v2 }
 0x1f6   : > { %1724 = vmatmul.mubr.msk.f32.gmra.mxu0 %vm919_vm1, %v965_v3 }
 0x1f7   : > { %1756 = vmatmul.mubr.msk.f32.gmra.mxu1 %vm919_vm1, %v945_v4  ;;  %1726 = vmatprep.mubr.msk.f32.mxu0 %vm919_vm1, %v966_v5 }
 0x1f8   : > { %1758 = vmatprep.mubr.msk.f32.mxu1 %vm919_vm1, %v946_v6 }
 0x1fa   : > { %1727 = vmatmul.mubr.msk.f32.gmra.mxu0 %vm919_vm1, %v967_v7 }
 0x1fb   : > { %1759 = vmatmul.mubr.msk.f32.gmra.mxu1 %vm919_vm1, %v947_v8  ;;  %1729 = vmatprep.mubr.msk.f32.mxu0 %vm919_vm1, %v968_v9 }
 0x1fc   : > { %1761 = vmatprep.mubr.msk.f32.mxu1 %vm919_vm1, %v948_v10 }
 0x1fe   : > { %1730 = vmatmul.mubr.msk.f32.gmra.mxu0 %vm919_vm1, %v969_v11 }
 0x1ff   : > { %1762 = vmatmul.mubr.msk.f32.gmra.mxu1 %vm919_vm1, %v949_v12  ;;  %1732 = vmatprep.mubr.msk.f32.mxu0 %vm919_vm1, %v970_v13 }
 0x200   : > { %1764 = vmatprep.mubr.msk.f32.mxu1 %vm919_vm1, %v950_v14 }
 0x202   : > { %1733 = vmatmul.mubr.msk.f32.gmra.mxu0 %vm919_vm1, %v971_v15 }
 0x203   : > { %1765 = vmatmul.mubr.msk.f32.gmra.mxu1 %vm919_vm1, %v951_v16  ;;  %1735 = vmatprep.mubr.msk.f32.mxu0 %vm919_vm1, %v972_v17 }
 0x204   : > { %1767 = vmatprep.mubr.msk.f32.mxu1 %vm919_vm1, %v952_v18 }
 0x206   : > { %1736 = vmatmul.mubr.msk.f32.gmra.mxu0 %vm919_vm1, %v973_v19 }
 0x207   : > { %1768 = vmatmul.mubr.msk.f32.gmra.mxu1 %vm919_vm1, %v953_v20  ;;  %1738 = vmatprep.mubr.msk.f32.mxu0 %vm919_vm1, %v974_v21 }
 0x208   : > { %1770 = vmatprep.mubr.msk.f32.mxu1 %vm919_vm1, %v954_v22 }
 0x20a   : > { %1739 = vmatmul.mubr.msk.f32.gmra.mxu0 %vm919_vm1, %v975_v23 }
 0x20b   : > { %1771 = vmatmul.mubr.msk.f32.gmra.mxu1 %vm919_vm1, %v955_v24 }
 0x2ae   : > { %v1719_v25 = vpop.f32.mrf.mxu0 }
 0x2af   : > { %v1751_v26 = vpop.f32.mrf.mxu1 }
 0x2b0   : > { %v1293_v27 = vadd.f32 %v1751_v26, %v1719_v25  ;;  %v1094_v28 = vpop.f32.mrf.mxu0 }
 0x2b1   : > { %v1287_v29 = vpop.f32.mrf.mxu1 }
 0x2b2   : > { %1367 = vst [vmem:[%s2212_s19 + $0x8] sm:$0xff] %v1293_v27  ;;  %v1288_v30 = vadd.f32 %v1287_v29, %v1094_v28  ;;  %v1722_v31 = vpop.f32.mrf.mxu0 }
 0x2b3   : > { %v1754_v32 = vpop.f32.mrf.mxu1 }
 0x2b4   : > { %1366 = vst [vmem:[%s2212_s19] sm:$0xff] %v1288_v30  ;;  %v1303_v33 = vadd.f32 %v1754_v32, %v1722_v31  ;;  %v1104_v34 = vpop.f32.mrf.mxu0 }
 0x2b5   : > { %v1297_v35 = vpop.f32.mrf.mxu1 }
 0x2b6   : > { %1369 = vst [vmem:[%s2212_s19 + $0x18] sm:$0xff] %v1303_v33  ;;  %v1298_v36 = vadd.f32 %v1297_v35, %v1104_v34  ;;  %v1725_v37 = vpop.f32.mrf.mxu0 }
 0x2b7   : > { %v1757_v38 = vpop.f32.mrf.mxu1 }
 0x2b8   : > { %1368 = vst [vmem:[%s2212_s19 + $0x10] sm:$0xff] %v1298_v36  ;;  %v1313_v39 = vadd.f32 %v1757_v38, %v1725_v37  ;;  %v1114_v40 = vpop.f32.mrf.mxu0 }
 0x2b9   : > { %v1307_v41 = vpop.f32.mrf.mxu1 }
 0x2ba   : > { %1371 = vst [vmem:[%s2212_s19 + $0x28] sm:$0xff] %v1313_v39  ;;  %v1308_v42 = vadd.f32 %v1307_v41, %v1114_v40  ;;  %v1728_v43 = vpop.f32.mrf.mxu0 }
 0x2bb   : > { %v1760_v44 = vpop.f32.mrf.mxu1 }
 0x2bc   : > { %1370 = vst [vmem:[%s2212_s19 + $0x20] sm:$0xff] %v1308_v42  ;;  %v1323_v45 = vadd.f32 %v1760_v44, %v1728_v43  ;;  %v1124_v46 = vpop.f32.mrf.mxu0 }
 0x2bd   : > { %v1317_v47 = vpop.f32.mrf.mxu1 }
 0x2be   : > { %1373 = vst [vmem:[%s2212_s19 + $0x38] sm:$0xff] %v1323_v45  ;;  %v1318_v48 = vadd.f32 %v1317_v47, %v1124_v46  ;;  %v1731_v49 = vpop.f32.mrf.mxu0 }
 0x2bf   : > { %v1763_v50 = vpop.f32.mrf.mxu1 }
 0x2c0   : > { %1372 = vst [vmem:[%s2212_s19 + $0x30] sm:$0xff] %v1318_v48  ;;  %v1333_v51 = vadd.f32 %v1763_v50, %v1731_v49  ;;  %v1134_v52 = vpop.f32.mrf.mxu0 }
 0x2c1   : > { %v1327_v53 = vpop.f32.mrf.mxu1 }
 0x2c2   : > { %1375 = vst [vmem:[%s2212_s19 + $0x48] sm:$0xff] %v1333_v51  ;;  %v1328_v54 = vadd.f32 %v1327_v53, %v1134_v52  ;;  %v1734_v55 = vpop.f32.mrf.mxu0 }
 0x2c3   : > { %v1766_v56 = vpop.f32.mrf.mxu1 }
 0x2c4   : > { %1374 = vst [vmem:[%s2212_s19 + $0x40] sm:$0xff] %v1328_v54  ;;  %v1343_v57 = vadd.f32 %v1766_v56, %v1734_v55  ;;  %v1144_v58 = vpop.f32.mrf.mxu0 }
 0x2c5   : > { %v1337_v59 = vpop.f32.mrf.mxu1 }
 0x2c6   : > { %1377 = vst [vmem:[%s2212_s19 + $0x58] sm:$0xff] %v1343_v57  ;;  %v1338_v60 = vadd.f32 %v1337_v59, %v1144_v58  ;;  %v1737_v61 = vpop.f32.mrf.mxu0 }
 0x2c7   : > { %v1769_v62 = vpop.f32.mrf.mxu1 }
 0x2c8   : > { %1376 = vst [vmem:[%s2212_s19 + $0x50] sm:$0xff] %v1338_v60  ;;  %v1353_v63 = vadd.f32 %v1769_v62, %v1737_v61  ;;  %v1154_v0 = vpop.f32.mrf.mxu0 }
 0x2c9   : > { %v1347_v1 = vpop.f32.mrf.mxu1 }
 0x2ca   : > { %1379 = vst [vmem:[%s2212_s19 + $0x68] sm:$0xff] %v1353_v63  ;;  %v1348_v2 = vadd.f32 %v1347_v1, %v1154_v0  ;;  %v1740_v3 = vpop.f32.mrf.mxu0 }
 0x2cb   : > { %v1772_v4 = vpop.f32.mrf.mxu1 }
 0x2cc   : > { %1378 = vst [vmem:[%s2212_s19 + $0x60] sm:$0xff] %v1348_v2  ;;  %v1363_v5 = vadd.f32 %v1772_v4, %v1740_v3  ;;  %v1164_v6 = vpop.f32.mrf.mxu0 }
 0x2cd   : > { %v1357_v7 = vpop.f32.mrf.mxu1 }
 0x2ce   : > { %1381 = vst [vmem:[%s2212_s19 + $0x78] sm:$0xff] %v1363_v5  ;;  %v1358_v8 = vadd.f32 %v1357_v7, %v1164_v6 }
 0x2d0   : > { %1380 = vst [vmem:[%s2212_s19 + $0x70] sm:$0xff] %v1358_v8 }
 0x2d1 PF: > { %s1604_s24 = sshll.u32 %s2017_s27, 11  ;;  %s1396_s29 = sshll.u32 %s2212_s19, 4  ;;  %s2391_s29 = int_to_ptr.vmem [resolvable:$true] %s1396_s29 }
 0x2d2   : > { %s2388_s28 = scalar_lea.hbm %s2458_s6, %s1604_s24  ;;  %s2477_s20 = sand.u32 1, %s1997_s22  }
 0x2d3   : > { %s2395_s10 = scalar_lea.sflag [#allocation5], %s2477_s20  ;;  %s1921_s7 = scalar_lea.vmem %s2391_s29, 2048 }
 0x2d4   : > { %p1922_p8 = scmp.ne.s32.totalorder %s2391_s29, %s1921_s7  ;;  %s2032_s27 = smov [#allocation4]  }
 0x2d5   : > { %s1925_s8 = sshll.u32 %s2032_s27, 4  ;;  %s1926_s8 = int_to_ptr.vmem [resolvable:$false] %s1925_s8 }
 0x2d6   : > { %p1923_p9 = pnand %p1922_p8, %p2142_p7  ;;  %s1927_s26 = scalar_lea.vmem %s1926_s8, 4096 }
 0x2d7   : > { %p1928_p11 = scmp.lt.s32.totalorder %s2391_s29, %s1926_s8  ;;  %p1929_p13 = scmp.lt.s32.totalorder %s1927_s26, %s1921_s7 }
 0x2d8   : > { %p1924_p10 = pneg %p1923_p9 }
 0x2d9   : > { %p1930_p0 = por %p1929_p13, %p1928_p11 }
 0x2db   : > { %p1931_p1 = pnand %p1930_p0, %p1924_p10 }
 0x2dd   : > { %1934 = shalt.err (!%p1931_p1)
}
 0x2de   : > { %s1935_s19 = scalar_lea.hbm %s2388_s28, 2048  ;;  %s1939_s17 = scalar_lea.hbm %s2458_s6, 6144 }
 0x2df   : > { %p1936_p2 = scmp.ne.s32.totalorder %s2388_s28, %s1935_s19  ;;  %p1940_p5 = scmp.lt.s32.totalorder %s2388_s28, %s2458_s6 }
 0x2e0   : > { %p1941_p6 = scmp.lt.s32.totalorder %s1939_s17, %s1935_s19 }
 0x2e1   : > { %p1937_p3 = pnand %p1936_p2, %p2142_p7 }
 0x2e2   : > { %p1942_p8 = por %p1941_p6, %p1940_p5 }
 0x2e3   : > { %p1938_p4 = pneg %p1937_p3 }
 0x2e5   : > { %p1943_p9 = pnand %p1942_p8, %p1938_p4 }
 0x2e7   : > { %1946 = shalt.err (!%p1943_p9)
}
 0x2e8   : > { %s2033_s13 = smov 128   ;;  %s2034_s9 = smov 8  }
 0x2e9   : > { %1789 = dma.vmem_to_hbm [thread:$0]  (%p2142_p7), %s2391_s29, 2048, %s2388_s28, %s2395_s10, %s2033_s13, %s2033_s13, %s2034_s9  }
 0x2ea PF: > { %p1795_p10 = scmp.ge.s32.totalorder %s2029_s30, 2  ;;  %s1411_s24 = sand.u32 1, %s1993_s21  }
 0x2eb   : > { %s1412_s0 = scalar_lea.sflag [#allocation5], %s1411_s24 }
 0x2ec   : > { %p1792_p11 = pnand %p1795_p10, %p2150_p12 }
 0x2ee   : > { %p1793_p13 = pneg %p1792_p11 }
 0x2f0   : > { %1988 = dma.done.wait (%p1793_p13), %s1412_s0, 2048  }
 0x2f1   : > { %1990 = vsyncadd (%p1793_p13), %s1412_s0, 4294965248  ;;  %s19_s30 = sadd.s32 1, %s2029_s30   ;;  %s2478_s25 = sld [smem:[#allocation12_spill]] }
 0x2f2   : > { %p16_p0 = scmp.ge.s32.totalorder %s19_s30, 8   ;;  %s2479_s24 = sld [smem:[#allocation7_spill]] }
 0x2f3   : > { %s2480_s15 = sld [smem:[#allocation13_spill]]  ;;  %s2485_s21 = smov %s1997_s22 }
 0x2f4   : > { %s2481_s26 = sld [smem:[#allocation8_spill]]  ;;  %s2486_s22 = smov %s2001_s23 }
 0x2f5   : > { %s2482_s27 = sld [smem:[#allocation9_spill]]  ;;  %18 = sbr.rel (!%p16_p0) target bundleno = 8 (0x8), region = 139 }
 0x2f6   : > { %s2483_s28 = sld [smem:[#allocation10_spill]] }
 0x2f7   : > { %s2484_s29 = sld [smem:[#allocation11_spill]]  ;;  %s2487_s23 = smov %s2478_s25 }
 0x2f9   : > { %s2488_s25 = smov %s2480_s15 }
 0x2fa   :  { %1417 = vsyncpa [#allocation5], 1 }
 0x2fb   :  { %1419 = vsyncpa [#allocation5 + $0x1], 1 }

</bundles_post_ra>
